<compile_context>
chip_gen: v7x
topology: tpu7x:2x2x1
jax: 0.10.0
libtpu: 0.0.40
codegen_flags: <defaults>
</compile_context>

<pallas_src>
import functools

import jax
import jax.numpy as jnp
from jax.experimental import pallas as pl
from jax.experimental.pallas import tpu as pltpu

_LANES = 128
_MAX_BLOCK_ROWS = 4096  # (4096, 128) f32 = 2 MiB per input per pipeline buffer


def _fmeasure_sums_kernel(x_ref, t_ref, sums_ref, tp_acc, sx_acc, st_acc, *,
                          in_sigmoid, block_rows, valid_rows_last):
    """Accumulates [sum(x*t), sum(x), sum(t)] into a (3,) SMEM output."""
    i = pl.program_id(0)
    last = pl.num_programs(0) - 1

    @pl.when(i == 0)
    def _init():
        tp_acc[...] = jnp.zeros_like(tp_acc)
        sx_acc[...] = jnp.zeros_like(sx_acc)
        st_acc[...] = jnp.zeros_like(st_acc)

    xv = x_ref[...].astype(jnp.float32)
    tv = t_ref[...].astype(jnp.float32)
    if in_sigmoid:
        xv = jax.nn.sigmoid(xv)

    def _accumulate(xb, tb):
        tp_acc[...] += jnp.sum(xb * tb, axis=0, keepdims=True)
        sx_acc[...] += jnp.sum(xb, axis=0, keepdims=True)
        st_acc[...] += jnp.sum(tb, axis=0, keepdims=True)

    if valid_rows_last == block_rows:
        # All blocks (including the last) are fully valid: no masking anywhere.
        _accumulate(xv, tv)
    else:
        # Only the last grid step sees a ragged block; mask only there so the
        # steady-state loop is pure load + mul + accumulate.
        @pl.when(i < last)
        def _steady():
            _accumulate(xv, tv)

        @pl.when(i == last)
        def _tail():
            row_ids = jax.lax.broadcasted_iota(
                jnp.int32, (block_rows, _LANES), 0)
            m = row_ids < valid_rows_last
            # Mask before any arithmetic: garbage/NaN in OOB rows never mixes
            # with valid data.
            _accumulate(jnp.where(m, xv, 0.0), jnp.where(m, tv, 0.0))

    @pl.when(i == last)
    def _finalize():
        sums_ref[0] = jnp.sum(tp_acc[...])
        sums_ref[1] = jnp.sum(sx_acc[...])
        sums_ref[2] = jnp.sum(st_acc[...])


def fmeasure_loss(inputs, targets, *, precision_weight=1.0, recall_weight=1.0,
                  in_sigmoid=False, max_block_rows=_MAX_BLOCK_ROWS):
    """JAX/Pallas equivalent of FMeasureLoss.forward(inputs, targets)."""
    x = inputs.reshape(-1)
    t = targets.reshape(-1)
    n = x.shape[0]

    # Pad only to the next multiple of 128 lanes (a no-op for typical NCHW
    # sizes, so usually the reshape below is free — no extra HBM pass).
    n128 = pl.cdiv(n, _LANES) * _LANES
    if n128 != n:
        # Sigmoid path: pad logits with a large negative value so
        # sigmoid(pad) == 0 and no extra in-kernel masking is needed.
        x_pad = -1e4 if in_sigmoid else 0
        x = jnp.pad(x, (0, n128 - n), constant_values=x_pad)
        t = jnp.pad(t, (0, n128 - n))

    rows = n128 // _LANES
    if rows <= max_block_rows:
        block_rows = rows          # block == full array extent (always legal)
    else:
        block_rows = max_block_rows  # multiple of 8 by construction
    grid_size = pl.cdiv(rows, block_rows)
    valid_rows_last = rows - (grid_size - 1) * block_rows

    x2 = x.reshape(rows, _LANES)
    t2 = t.reshape(rows, _LANES)

    kernel = functools.partial(
        _fmeasure_sums_kernel,
        in_sigmoid=in_sigmoid,
        block_rows=block_rows,
        valid_rows_last=valid_rows_last)

    sums = pl.pallas_call(
        kernel,
        out_shape=jax.ShapeDtypeStruct((3,), jnp.float32),
        grid=(grid_size,),
        in_specs=[
            pl.BlockSpec((block_rows, _LANES), lambda i: (i, 0)),
            pl.BlockSpec((block_rows, _LANES), lambda i: (i, 0)),
        ],
        out_specs=pl.BlockSpec(memory_space=pltpu.MemorySpace.SMEM),
        scratch_shapes=[
            pltpu.VMEM((1, _LANES), jnp.float32),  # TP partials per lane
            pltpu.VMEM((1, _LANES), jnp.float32),  # sum(x) partials per lane
            pltpu.VMEM((1, _LANES), jnp.float32),  # sum(t) partials per lane
        ],
        compiler_params=pltpu.CompilerParams(
            dimension_semantics=("arbitrary",),
            vmem_limit_bytes=32 << 20),
    )(x2, t2)

    tp, sum_x, sum_t = sums[0], sums[1], sums[2]
    # Matches the PyTorch module exactly:
    fp = sum_t - tp   # sum((1 - x) * t)
    fn = sum_x - tp   # sum(x * (1 - t))
    precision = tp / (tp + fp)
    recall = tp / (tp + fn)
    loss = 1.0 - precision * recall * (precision_weight + recall_weight) / (
        precision * precision_weight + recall * recall_weight)
    return loss


def _reference_fmeasure_loss(inputs, targets, *, precision_weight=1.0,
                             recall_weight=1.0, in_sigmoid=False):
    x = inputs.reshape(-1).astype(jnp.float32)
    t = targets.reshape(-1).astype(jnp.float32)
    if in_sigmoid:
        x = jax.nn.sigmoid(x)
    tp = jnp.sum(x * t)
    fp = jnp.sum((1.0 - x) * t)
    fn = jnp.sum(x * (1.0 - t))
    precision = tp / (tp + fp)
    recall = tp / (tp + fn)
    return 1.0 - precision * recall * (precision_weight + recall_weight) / (
        precision * precision_weight + recall * recall_weight)


if __name__ == "__main__":
    key = jax.random.PRNGKey(0)
    k_in, k_tg = jax.random.split(key)

    # 1) Small NCHW example (n divisible by 128 -> zero-copy reshape path).
    inputs = jax.random.uniform(k_in, (2, 4, 16, 16), dtype=jnp.float32)
    targets = (jax.random.uniform(k_tg, (2, 4, 16, 16)) > 0.5).astype(jnp.float32)

    loss = fmeasure_loss(inputs, targets,
                         precision_weight=1.0, recall_weight=1.0,
                         in_sigmoid=False)
    loss = jax.block_until_ready(loss)
    ref = _reference_fmeasure_loss(inputs, targets,
                                   precision_weight=1.0, recall_weight=1.0,
                                   in_sigmoid=False)
    assert jnp.allclose(loss, ref, rtol=1e-5, atol=1e-5), (loss, ref)

    # 2) Sigmoid path (logits).
    logits = jax.random.normal(k_in, (2, 4, 16, 16), dtype=jnp.float32)
    loss_sig = fmeasure_loss(logits, targets, in_sigmoid=True)
    loss_sig = jax.block_until_ready(loss_sig)
    ref_sig = _reference_fmeasure_loss(logits, targets, in_sigmoid=True)
    assert jnp.allclose(loss_sig, ref_sig, rtol=1e-5, atol=1e-5), (loss_sig, ref_sig)

    # 3) Ragged size (n not a multiple of 128) AND a ragged last grid block:
    #    n = 2*3*17*11 = 1122 -> 9 padded rows; max_block_rows=8 -> grid of 2
    #    with a 1-valid-row last block, exercising the masked-tail code path.
    k_in2, k_tg2 = jax.random.split(jax.random.PRNGKey(0), 2)
    logits_r = jax.random.normal(k_in2, (2, 3, 17, 11), dtype=jnp.float32)
    targets_r = (jax.random.uniform(k_tg2, (2, 3, 17, 11)) > 0.5).astype(jnp.float32)
    loss_r = fmeasure_loss(logits_r, targets_r,
                           precision_weight=2.0, recall_weight=0.5,
                           in_sigmoid=True, max_block_rows=8)
    loss_r = jax.block_until_ready(loss_r)
    ref_r = _reference_fmeasure_loss(logits_r, targets_r,
                                     precision_weight=2.0, recall_weight=0.5,
                                     in_sigmoid=True)
    assert jnp.allclose(loss_r, ref_r, rtol=1e-5, atol=1e-5), (loss_r, ref_r)

    print("KERNEL_OK")
</pallas_src>

<mosaic_0001>
module attributes {stable_mosaic.version = 11 : i64} {
  func.func @_fmeasure_sums_kernel(%arg0: i32, %arg1: memref<16x128xf32, #tpu.memory_space<vmem>>, %arg2: memref<16x128xf32, #tpu.memory_space<vmem>>, %arg3: memref<3xf32, #tpu.memory_space<smem>>, %arg4: memref<1x128xf32, #tpu.memory_space<vmem>>, %arg5: memref<1x128xf32, #tpu.memory_space<vmem>>, %arg6: memref<1x128xf32, #tpu.memory_space<vmem>>) attributes {dimension_semantics = [#tpu.dimension_semantics<arbitrary>], iteration_bounds = array<i64: 1>, scalar_prefetch = 0 : i64, scratch_operands = 3 : i64, tpu.core_type = #tpu.core_type<tc>, window_params = [{transform_indices = @transform_0, window_bounds = array<i64: 16, 128>}, {transform_indices = @transform_1, window_bounds = array<i64: 16, 128>}, {transform_indices = @transform_2, window_bounds = array<i64: 3>}]} {
    %c0_i32 = arith.constant 0 : i32
    %0 = arith.cmpi eq, %arg0, %c0_i32 : i32
    %1 = arith.extui %0 : i1 to i32
    %c0_i32_0 = arith.constant 0 : i32
    %2 = arith.cmpi ne, %1, %c0_i32_0 : i32
    scf.if %2 {
      %cst_20 = arith.constant 0.000000e+00 : f32
      %24 = vector.broadcast %cst_20 : f32 to vector<1x128xf32>
      %c0_21 = arith.constant 0 : index
      %c0_22 = arith.constant 0 : index
      %25 = vector.load %arg4[%c0_21, %c0_22] : memref<1x128xf32, #tpu.memory_space<vmem>>, vector<1x128xf32>
      tpu.vector_store %arg4[%c0_21, %c0_22], %24 {strides = array<i32>} : memref<1x128xf32, #tpu.memory_space<vmem>>, vector<1x128xf32>,
      %cst_23 = arith.constant 0.000000e+00 : f32
      %26 = vector.broadcast %cst_23 : f32 to vector<1x128xf32>
      %c0_24 = arith.constant 0 : index
      %c0_25 = arith.constant 0 : index
      %27 = vector.load %arg5[%c0_24, %c0_25] : memref<1x128xf32, #tpu.memory_space<vmem>>, vector<1x128xf32>
      tpu.vector_store %arg5[%c0_24, %c0_25], %26 {strides = array<i32>} : memref<1x128xf32, #tpu.memory_space<vmem>>, vector<1x128xf32>,
      %cst_26 = arith.constant 0.000000e+00 : f32
      %28 = vector.broadcast %cst_26 : f32 to vector<1x128xf32>
      %c0_27 = arith.constant 0 : index
      %c0_28 = arith.constant 0 : index
      %29 = vector.load %arg6[%c0_27, %c0_28] : memref<1x128xf32, #tpu.memory_space<vmem>>, vector<1x128xf32>
      tpu.vector_store %arg6[%c0_27, %c0_28], %28 {strides = array<i32>} : memref<1x128xf32, #tpu.memory_space<vmem>>, vector<1x128xf32>,
    } else {
    }
    %c0 = arith.constant 0 : index
    %c0_1 = arith.constant 0 : index
    %3 = vector.load %arg1[%c0, %c0_1] : memref<16x128xf32, #tpu.memory_space<vmem>>, vector<16x128xf32>
    %c0_2 = arith.constant 0 : index
    %c0_3 = arith.constant 0 : index
    %4 = vector.load %arg2[%c0_2, %c0_3] : memref<16x128xf32, #tpu.memory_space<vmem>>, vector<16x128xf32>
    %c0_4 = arith.constant 0 : index
    %c0_5 = arith.constant 0 : index
    %5 = vector.load %arg4[%c0_4, %c0_5] : memref<1x128xf32, #tpu.memory_space<vmem>>, vector<1x128xf32>
    %6 = arith.mulf %3, %4 : vector<16x128xf32>
    %cst = arith.constant dense<0.000000e+00> : vector<128xf32>
    %7 = vector.multi_reduction <add>, %6, %cst [0] : vector<16x128xf32> to vector<128xf32>
    %8 = vector.shape_cast %7 : vector<128xf32> to vector<1x128xf32>
    %9 = arith.addf %5, %8 : vector<1x128xf32>
    %c0_6 = arith.constant 0 : index
    %c0_7 = arith.constant 0 : index
    %10 = vector.load %arg4[%c0_6, %c0_7] : memref<1x128xf32, #tpu.memory_space<vmem>>, vector<1x128xf32>
    tpu.vector_store %arg4[%c0_6, %c0_7], %9 {strides = array<i32>} : memref<1x128xf32, #tpu.memory_space<vmem>>, vector<1x128xf32>,
    %c0_8 = arith.constant 0 : index
    %c0_9 = arith.constant 0 : index
    %11 = vector.load %arg5[%c0_8, %c0_9] : memref<1x128xf32, #tpu.memory_space<vmem>>, vector<1x128xf32>
    %cst_10 = arith.constant dense<0.000000e+00> : vector<128xf32>
    %12 = vector.multi_reduction <add>, %3, %cst_10 [0] : vector<16x128xf32> to vector<128xf32>
    %13 = vector.shape_cast %12 : vector<128xf32> to vector<1x128xf32>
    %14 = arith.addf %11, %13 : vector<1x128xf32>
    %c0_11 = arith.constant 0 : index
    %c0_12 = arith.constant 0 : index
    %15 = vector.load %arg5[%c0_11, %c0_12] : memref<1x128xf32, #tpu.memory_space<vmem>>, vector<1x128xf32>
    tpu.vector_store %arg5[%c0_11, %c0_12], %14 {strides = array<i32>} : memref<1x128xf32, #tpu.memory_space<vmem>>, vector<1x128xf32>,
    %c0_13 = arith.constant 0 : index
    %c0_14 = arith.constant 0 : index
    %16 = vector.load %arg6[%c0_13, %c0_14] : memref<1x128xf32, #tpu.memory_space<vmem>>, vector<1x128xf32>
    %cst_15 = arith.constant dense<0.000000e+00> : vector<128xf32>
    %17 = vector.multi_reduction <add>, %4, %cst_15 [0] : vector<16x128xf32> to vector<128xf32>
    %18 = vector.shape_cast %17 : vector<128xf32> to vector<1x128xf32>
    %19 = arith.addf %16, %18 : vector<1x128xf32>
    %c0_16 = arith.constant 0 : index
    %c0_17 = arith.constant 0 : index
    %20 = vector.load %arg6[%c0_16, %c0_17] : memref<1x128xf32, #tpu.memory_space<vmem>>, vector<1x128xf32>
    tpu.vector_store %arg6[%c0_16, %c0_17], %19 {strides = array<i32>} : memref<1x128xf32, #tpu.memory_space<vmem>>, vector<1x128xf32>,
    %c0_i32_18 = arith.constant 0 : i32
    %21 = arith.cmpi eq, %arg0, %c0_i32_18 : i32
    %22 = arith.extui %21 : i1 to i32
    %c0_i32_19 = arith.constant 0 : i32
    %23 = arith.cmpi ne, %22, %c0_i32_19 : i32
    scf.if %23 {
      %c0_20 = arith.constant 0 : index
      %c0_21 = arith.constant 0 : index
      %24 = vector.load %arg4[%c0_20, %c0_21] : memref<1x128xf32, #tpu.memory_space<vmem>>, vector<1x128xf32>
      %25 = vector.shape_cast %24 : vector<1x128xf32> to vector<1x1x128xf32>
      %cst_22 = arith.constant dense<0.000000e+00> : vector<1xf32>
      %26 = vector.multi_reduction <add>, %25, %cst_22 [1, 2] : vector<1x1x128xf32> to vector<1xf32>
      %27 = vector.shape_cast %26 : vector<1xf32> to vector<1x1x1xf32>
      %28 = vector.extract %27[0, 0, 0] : f32 from vector<1x1x1xf32>
      %c0_23 = arith.constant 0 : index
      %29 = memref.load %arg3[%c0_23] : memref<3xf32, #tpu.memory_space<smem>>
      memref.store %28, %arg3[%c0_23] : memref<3xf32, #tpu.memory_space<smem>>
      %c0_24 = arith.constant 0 : index
      %c0_25 = arith.constant 0 : index
      %30 = vector.load %arg5[%c0_24, %c0_25] : memref<1x128xf32, #tpu.memory_space<vmem>>, vector<1x128xf32>
      %31 = vector.shape_cast %30 : vector<1x128xf32> to vector<1x1x128xf32>
      %cst_26 = arith.constant dense<0.000000e+00> : vector<1xf32>
      %32 = vector.multi_reduction <add>, %31, %cst_26 [1, 2] : vector<1x1x128xf32> to vector<1xf32>
      %33 = vector.shape_cast %32 : vector<1xf32> to vector<1x1x1xf32>
      %34 = vector.extract %33[0, 0, 0] : f32 from vector<1x1x1xf32>
      %c1 = arith.constant 1 : index
      %35 = memref.load %arg3[%c1] : memref<3xf32, #tpu.memory_space<smem>>
      memref.store %34, %arg3[%c1] : memref<3xf32, #tpu.memory_space<smem>>
      %c0_27 = arith.constant 0 : index
      %c0_28 = arith.constant 0 : index
      %36 = vector.load %arg6[%c0_27, %c0_28] : memref<1x128xf32, #tpu.memory_space<vmem>>, vector<1x128xf32>
      %37 = vector.shape_cast %36 : vector<1x128xf32> to vector<1x1x128xf32>
      %cst_29 = arith.constant dense<0.000000e+00> : vector<1xf32>
      %38 = vector.multi_reduction <add>, %37, %cst_29 [1, 2] : vector<1x1x128xf32> to vector<1xf32>
      %39 = vector.shape_cast %38 : vector<1xf32> to vector<1x1x1xf32>
      %40 = vector.extract %39[0, 0, 0] : f32 from vector<1x1x1xf32>
      %c2 = arith.constant 2 : index
      %41 = memref.load %arg3[%c2] : memref<3xf32, #tpu.memory_space<smem>>
      memref.store %40, %arg3[%c2] : memref<3xf32, #tpu.memory_space<smem>>
    } else {
    }
    return
  }
  func.func @transform_0(%arg0: i32) -> (i32, i32) {
    %c0_i32 = arith.constant 0 : i32
    %c0_i32_0 = arith.constant 0 : i32
    return %arg0, %c0_i32 : i32, i32
  }
  func.func @transform_1(%arg0: i32) -> (i32, i32) {
    %c0_i32 = arith.constant 0 : i32
    %c0_i32_0 = arith.constant 0 : i32
    return %arg0, %c0_i32 : i32, i32
  }
  func.func @transform_2(%arg0: i32) -> i32 {
    %c0_i32 = arith.constant 0 : i32
    %c0_i32_0 = arith.constant 0 : i32
    return %c0_i32 : i32
  }
}

</mosaic_0001>

<bundles_post_ra>
// kernel: tpu_custom_call.1
= control target key start
LH: loop header
LB: loop body
LE: loop exit
PB: predicated region body
PF: predicated region fallthrough
CT: control target
= control target key end

     0   :  { %7 = vsyncpa [#allocation6], 0  ;;  %s270_s0 = inlined_call_operand.hbm [shape: f32[16,128], index: 0, kind: input, shape index: {}]   ;;  %s271_s1 = inlined_call_operand.hbm [shape: f32[16,128], index: 1, kind: input, shape index: {}]   ;;  %s272_s2 = inlined_call_operand.hbm [shape: f32[3], index: 2, kind: output, shape index: {}]  }
   0x1   :  { %8 = vsyncpa [#allocation9], 0 }
   0x2   :  { %9 = vsyncpa [#allocation7], 0  ;;  %s213_s9 = smov [#allocation5]   ;;  %s153_s13 = scalar_lea.hbm %s270_s0, 256 }
   0x3   :  { %s15_s10 = sshll.u32 %s213_s9, 4  ;;  %p154_p0 = scmp.ne.s32.totalorder %s270_s0, %s153_s13  ;;  %s16_s10 = int_to_ptr.vmem [resolvable:$true] %s15_s10 }
   0x4   :  { %p157_p1 = scmp.lt.u32.totalorder %s153_s13, %s270_s0 }
   0x6   :  { %p159_p2 = pnand %p157_p1, %p154_p0 }
   0x8   :  { %162 = shalt.err (!%p159_p2)
}
   0x9   :  { %s163_s18 = scalar_lea.vmem %s16_s10, 256  ;;  %p168_p4 = scmp.lt.s32.totalorder %s16_s10, %s16_s10 }
   0xa   :  { %p164_p3 = scmp.ne.s32.totalorder %s16_s10, %s163_s18  ;;  %p169_p5 = scmp.lt.s32.totalorder %s163_s18, %s163_s18 }
   0xc   :  { %p170_p6 = por %p169_p5, %p168_p4 }
   0xe   :  { %p171_p7 = pnand %p170_p6, %p164_p3 }
  0x10   :  { %174 = shalt.err (!%p171_p7)
}
  0x11   :  { %s214_s19 = smov 128   ;;  %s215_s20 = smov 8  }
  0x12   :  { %21 = dma.hbm_to_vmem [thread:$0]  %s270_s0, 256, %s16_s10, [#allocation6], %s214_s19, %s214_s19, %s215_s20  }
  0x13   :  { %s216_s23 = smov [#allocation8]   ;;  %s175_s27 = scalar_lea.hbm %s271_s1, 256 }
  0x14   :  { %s27_s24 = sshll.u32 %s216_s23, 4  ;;  %p176_p8 = scmp.ne.s32.totalorder %s271_s1, %s175_s27  ;;  %s28_s24 = int_to_ptr.vmem [resolvable:$true] %s27_s24 }
  0x15   :  { %p179_p9 = scmp.lt.u32.totalorder %s175_s27, %s271_s1 }
  0x17   :  { %p181_p10 = pnand %p179_p9, %p176_p8 }
  0x19   :  { %184 = shalt.err (!%p181_p10)
}
  0x1a   :  { %s185_s4 = scalar_lea.vmem %s28_s24, 256  ;;  %p190_p12 = scmp.lt.s32.totalorder %s28_s24, %s28_s24 }
  0x1b   :  { %p186_p11 = scmp.ne.s32.totalorder %s28_s24, %s185_s4  ;;  %p191_p13 = scmp.lt.s32.totalorder %s185_s4, %s185_s4 }
  0x1d   :  { %p192_p0 = por %p191_p13, %p190_p12 }
  0x1f   :  { %p193_p1 = pnand %p192_p0, %p186_p11 }
  0x21   :  { %196 = shalt.err (!%p193_p1)
}
  0x22   :  { %33 = dma.hbm_to_vmem [thread:$0]  %s271_s1, 256, %s28_s24, [#allocation9], %s214_s19, %s214_s19, %s215_s20  }
  0x23   :  { %207 = dma.done.wait [#allocation6], 256  }
  0x24   :  { %208 = vsyncadd [#allocation6], 4294967040 }
  0x25   :  { %209 = dma.done.wait [#allocation9], 256  }
  0x26   :  { %210 = vsyncadd [#allocation9], 4294967040  ;;  %v217_v0 = vmov 0.0   ;;  %v49_v1 = vld [vmem:[#allocation8] sm:$0xff]  ;;  %v50_v2 = vld [vmem:[#allocation8 + $0x8] sm:$0xff]  ;;  %vm87_vm0 = vcmask 1040384  }
  0x27   :  { %46 = vst [vmem:[#allocation4] sm:$0x1] %v217_v0  ;;  %44 = vst [vmem:[#allocation2] sm:$0x1] %v217_v0  ;;  %v47_v3 = vld [vmem:[#allocation5] sm:$0xff]  ;;  %v74_v4 = vadd.f32 %v50_v2, %v49_v1  ;;  %v48_v5 = vld [vmem:[#allocation5 + $0x8] sm:$0xff] }
  0x28   :  { %45 = vst [vmem:[#allocation3] sm:$0x1] %v217_v0  ;;  %v52_v6 = vmul.f32 %v49_v1, %v47_v3  ;;  %v53_v7 = vmul.f32 %v50_v2, %v48_v5  ;;  %v64_v8 = vadd.f32 %v48_v5, %v47_v3  ;;  %s197_s10 = scalar_lea.hbm %s272_s2, 16 }
  0x29   :  { %v75_v9 = vrot.slane %v74_v4, 4  ;;  %p198_p2 = scmp.ne.s32.totalorder %s272_s2, %s197_s10  ;;  %p201_p3 = scmp.lt.u32.totalorder %s197_s10, %s272_s2 }
  0x2a   :  { %v54_v10 = vadd.f32 %v53_v7, %v52_v6  ;;  %v65_v11 = vrot.slane %v64_v8, 4 }
  0x2b   :  { %v76_v12 = vadd.f32 %v75_v9, %v74_v4  ;;  %p203_p4 = pnand %p201_p3, %p198_p2 }
  0x2c   :  { %v55_v13 = vrot.slane %v54_v10, 4  ;;  %v66_v14 = vadd.f32 %v65_v11, %v64_v8 }
  0x2d   :  { %v77_v15 = vrot.slane %v76_v12, 2 }
  0x2e   :  { %v56_v16 = vadd.f32 %v55_v13, %v54_v10  ;;  %v67_v17 = vrot.slane %v66_v14, 2  ;;  %v73_v22 = vld [vmem:[#allocation4] sm:$0x1]  ;;  %v51_v30 = vld [vmem:[#allocation2] sm:$0x1] }
  0x2f   :  { %v78_v18 = vadd.f32 %v77_v15, %v76_v12  ;;  %v63_v26 = vld [vmem:[#allocation3] sm:$0x1] }
  0x30   :  { %v57_v19 = vrot.slane %v56_v16, 2  ;;  %v68_v20 = vadd.f32 %v67_v17, %v66_v14 }
  0x31   :  { %v79_v21 = vrot.slane %v78_v18, 1 }
  0x32   :  { %v58_v23 = vadd.f32 %v57_v19, %v56_v16  ;;  %v69_v24 = vrot.slane %v68_v20, 1 }
  0x33   :  { %v80_v25 = vadd.f32 %v79_v21, %v78_v18 }
  0x34   :  { %v59_v27 = vrot.slane %v58_v23, 1  ;;  %v70_v28 = vadd.f32 %v69_v24, %v68_v20 }
  0x35   :  { %v81_v29 = vadd.f32 %v80_v25, %v73_v22 }
  0x36   :  { %v60_v31 = vadd.f32 %v59_v27, %v58_v23  ;;  %v71_v32 = vadd.f32 %v70_v28, %v63_v26 }
  0x37   :  { %82 = vst [vmem:[#allocation4] sm:$0x1] %v81_v29 }
  0x38   :  { %v61_v33 = vadd.f32 %v60_v31, %v51_v30  ;;  %72 = vst [vmem:[#allocation3] sm:$0x1] %v71_v32 }
  0x3a   :  { %62 = vst [vmem:[#allocation2] sm:$0x1] %v61_v33 }
  0x3e   :  { %v113_v34 = vld [vmem:[#allocation4] sm:$0x1] }
  0x3f   :  { %v114_v35 = vsel %vm87_vm0, %v113_v34, 0.0  ;;  %v100_v37 = vld [vmem:[#allocation3] sm:$0x1] }
  0x40   :  { %115 = vadd.xlane.f32.xlu1 %v114_v35  ;;  %v101_v39 = vsel %vm87_vm0, %v100_v37, 0.0 }
  0x41   :  { %v86_v36 = vld [vmem:[#allocation2] sm:$0x1] }
  0x42   :  { %v88_v38 = vsel %vm87_vm0, %v86_v36, 0.0 }
  0x43   :  { %89 = vadd.xlane.f32.xlu0 %v88_v38 }
  0x47   :  { %102 = vadd.xlane.f32.xlu0 %v101_v39 }
  0xcd   :  { %v116_v40 = vpop.xlane.xlu1 %115 }
  0xce   :  { %v117_v41 = vrot.slane %v116_v40, 4 }
  0xd0   :  { %v118_v42 = vadd.f32 %v117_v41, %v116_v40  ;;  %v90_v43 = vpop.xlane.xlu0 %89 }
  0xd1   :  { %v91_v44 = vrot.slane %v90_v43, 4 }
  0xd2   :  { %v119_v46 = vrot.slane %v118_v42, 2 }
  0xd3   :  { %v92_v45 = vadd.f32 %v91_v44, %v90_v43 }
  0xd4   :  { %v103_v47 = vpop.xlane.xlu0 %102  ;;  %v120_v52 = vadd.f32 %v119_v46, %v118_v42 }
  0xd5   :  { %v93_v48 = vrot.slane %v92_v45, 2  ;;  %v104_v49 = vrot.slane %v103_v47, 4 }
  0xd6   :  { %v121_v57 = vrot.slane %v120_v52, 1 }
  0xd7   :  { %v105_v50 = vadd.f32 %v104_v49, %v103_v47  ;;  %v94_v51 = vadd.f32 %v93_v48, %v92_v45 }
  0xd8   :  { %v122_v60 = vadd.f32 %v121_v57, %v120_v52 }
  0xd9   :  { %v106_v53 = vrot.slane %v105_v50, 2  ;;  %v95_v54 = vrot.slane %v94_v51, 1 }
  0xdb   :  { %v107_v55 = vadd.f32 %v106_v53, %v105_v50  ;;  %v96_v56 = vadd.f32 %v95_v54, %v94_v51 }
  0xdd   :  { %141 = vpush %v96_v56  ;;  %v108_v58 = vrot.slane %v107_v55, 1 }
  0xdf   :  { %v109_v59 = vadd.f32 %v108_v58, %v107_v55 }
  0xe1   :  { %143 = vpush %v109_v59 }
  0xe2   :  { %145 = vpush %v122_v60 }
 0x10e   :  { %s142_s1 = spop %141 }
 0x10f   :  { %99 = sst [smem:[#allocation10]] %s142_s1 }
 0x112   :  { %s144_s6 = spop %143 }
 0x113   :  { %112 = sst [smem:[#allocation10 + $0x1]] %s144_s6  ;;  %s146_s7 = spop %145 }
 0x114   :  { %125 = sst [smem:[#allocation10 + $0x2]] %s146_s7 }
 0x115   :  { %206 = shalt.err (!%p203_p4)
}
 0x116   :  { %s218_s15 = smov [#allocation10]  }
 0x117   :  { %133 = dma.smem_to_hbm %s218_s15, 16, %s272_s2, [#allocation7]  }
 0x118   :  { %211 = dma.done.wait [#allocation7], 16  }
 0x119   :  { %212 = vsyncadd [#allocation7], 4294967280 }
 0x11a   :  { %137 = sfence }
 0x11b   :  { %138 = vsyncpa [#allocation6], 1 }
 0x11c   :  { %139 = vsyncpa [#allocation9], 1 }
 0x11d   :  { %140 = vsyncpa [#allocation7], 1 }

</bundles_post_ra>
